<compile_context>
chip_gen: v5e
topology: v5e:2x2
jax: 0.10.0
libtpu: 0.0.40
codegen_flags: <defaults>
</compile_context>

<pallas_src>
import functools

import jax
import jax.numpy as jnp
from jax.experimental import pallas as pl
from jax.experimental.pallas import tpu as pltpu

D0, D1, D2, NUM_CLASSES = 444, 200, 20, 10

H1_PAD = 256                 # fc1 output width, lane aligned (200 live + 56 zero)
TAIL_PAD = 128               # shared tile: h2 in lanes [0,20), logits in lanes [64,74)
OUT_LANE_OFF = 64            # lane offset of the logits inside the tail tile
PACK_W = H1_PAD + TAIL_PAD   # 384-wide packed output slab: [ h1 | h2+out ]


def _leaky_relu(x, slope=0.1):
    return jnp.where(x >= 0, x, slope * x)


def _round_up(n, m):
    return ((n + m - 1) // m) * m


def _cdiv(a, b):
    return -(-a // b)


# --------------------------------------------------------------------------
# Kernel
# --------------------------------------------------------------------------
def mlp_kernel(x_ref, n0_ref, n1_ref, n2_ref,           # activations / bf16 noise
               w1_ref, w2_ref, w3_ref, b3_ref,          # prepped weights (VMEM-resident)
               packed_ref,                              # (tb, 384) f32 output slab
               *, nonlinear, std0, std1, std2):
    mm_dtype = w1_ref.dtype                             # bf16 (or f32)

    # x = x + noise_std[0] * randn_like(x)   (noise arrives bf16; add in f32)
    x = x_ref[...].astype(jnp.float32) + std0 * n0_ref[...].astype(jnp.float32)

    # h1 = fc1(x) (no bias); w1 output dim zero-padded 200->256 -> lanes 200.. are 0.
    h1 = jnp.dot(x.astype(mm_dtype), w1_ref[...],
                 preferred_element_type=jnp.float32)
    if nonlinear:
        h1 = _leaky_relu(h1)
    packed_ref[:, 0:H1_PAD] = h1                        # aligned 256-wide store

    # nh1 = h1 + std1 * noise at the full 256 width (no unaligned slice);
    # padded lanes multiply into zero rows of w2, so they contribute nothing.
    nh1 = h1 + std1 * n1_ref[...].astype(jnp.float32)

    # h2 = fc2(nh1) (no bias); w2 zero-padded 200->256 (in) and 20->128 (out).
    h2 = jnp.dot(nh1.astype(mm_dtype), w2_ref[...],
                 preferred_element_type=jnp.float32)
    if nonlinear:
        h2 = _leaky_relu(h2)                            # live lanes [0,20), rest exactly 0

    # TODO(synk): optional `pert` addition (self.pert != None) omitted; pert=None path.

    # nh2 = h2 + std2 * noise at full 128 width; padded lanes hit zero rows of w3.
    nh2 = h2 + std2 * n2_ref[...].astype(jnp.float32)

    # out = fc3(nh2) + bias; w3/b3 are packed so the 10 live logits land in
    # lanes [64,74) of a 128-wide tile and every other lane is exactly 0,
    # so the tile composes with h2 via a plain add -> one aligned store.
    out = jnp.dot(nh2.astype(mm_dtype), w3_ref[...],
                  preferred_element_type=jnp.float32)
    out = out + b3_ref[...]
    packed_ref[:, H1_PAD:PACK_W] = h2 + out             # aligned 128-wide store


# --------------------------------------------------------------------------
# One-time parameter prep (hoisted out of the hot path)
# --------------------------------------------------------------------------
def prepare_params(params, weight_dtype=jnp.bfloat16):
    """Transpose to (in, out), cast matmul weights to bf16, zero-pad both the
    input and output dims to lane-aligned widths, and place fc3's columns /
    bias at lane offset 64 so the logits pack next to h2 in one 128-wide tile.
    Call ONCE at init; pass the result to mlp_forward."""
    w1, w2, w3, b3 = params                  # PyTorch layout: (out, in)

    w1p = jnp.zeros((D0, H1_PAD), weight_dtype)
    w1p = w1p.at[:, :D1].set(w1.T.astype(weight_dtype))                 # (444, 256)

    w2p = jnp.zeros((H1_PAD, TAIL_PAD), weight_dtype)
    w2p = w2p.at[:D1, :D2].set(w2.T.astype(weight_dtype))               # (256, 128)

    w3p = jnp.zeros((TAIL_PAD, TAIL_PAD), weight_dtype)
    w3p = w3p.at[:D2, OUT_LANE_OFF:OUT_LANE_OFF + NUM_CLASSES].set(
        w3.T.astype(weight_dtype))                                      # (128, 128)

    b3p = jnp.zeros((1, TAIL_PAD), jnp.float32)
    b3p = b3p.at[0, OUT_LANE_OFF:OUT_LANE_OFF + NUM_CLASSES].set(
        b3.astype(jnp.float32))                                         # (1, 128)

    return (w1p, w2p, w3p, b3p)


def make_noise(key, batch, dtype=jnp.bfloat16):
    """Standard-normal noise in bf16 at the lane-padded widths the kernel
    consumes (the padded lanes are never used: they hit zero weight rows)."""
    k0, k1, k2 = jax.random.split(key, 3)
    n0 = jax.random.normal(k0, (batch, D0), dtype)
    n1 = jax.random.normal(k1, (batch, H1_PAD), dtype)
    n2 = jax.random.normal(k2, (batch, TAIL_PAD), dtype)
    return (n0, n1, n2)


# --------------------------------------------------------------------------
# Wrapper
# --------------------------------------------------------------------------
def mlp_forward(x, prepped_params, noise, noise_std, *,
                nonlinear=True, block_b=512):
    """x: (B, 444) f32 (or bf16).  prepped_params from prepare_params().
    noise from make_noise() (bf16, padded widths).  Returns (out, h1, h2)."""
    B = x.shape[0]
    w1p, w2p, w3p, b3p = prepped_params
    n0, n1, n2 = noise
    assert x.shape == (B, D0)
    assert n0.shape == (B, D0)
    assert n1.shape == (B, H1_PAD)
    assert n2.shape == (B, TAIL_PAD)

    # Batch tile: multiple of 8, capped at 2048 rows (VMEM), and no larger
    # than ceil(B/2) so the "parallel" batch axis keeps >= 2 grid steps
    # whenever B > 8 (both v7x TensorCores stay busy; v5e/v6e unaffected).
    half = _round_up(_cdiv(B, 2), 8)
    tb = max(8, min(_round_up(min(block_b, 2048), 8), half))
    grid = (_cdiv(B, tb),)   # ragged last block handled by Pallas masking (no jnp.pad)

    row_in = (D0 * x.dtype.itemsize + D0 * n0.dtype.itemsize
              + H1_PAD * n1.dtype.itemsize + TAIL_PAD * n2.dtype.itemsize)
    row_out = PACK_W * 4
    w_bytes = sum(int(a.size) * a.dtype.itemsize for a in (w1p, w2p, w3p, b3p))

    # Double-buffered activation/output blocks + (conservatively 2x) resident
    # weights + headroom; clamp to [16 MiB, 32 MiB] (safe on v5e/v6e/v7x).
    vmem_est = 2 * tb * (row_in + row_out) + 2 * w_bytes + (4 << 20)
    vmem_limit = int(min(max(vmem_est, 16 << 20), 32 << 20))

    kernel = functools.partial(
        mlp_kernel,
        nonlinear=bool(nonlinear),
        std0=float(noise_std[0]),
        std1=float(noise_std[1]),
        std2=float(noise_std[2]),
    )

    flops = 2 * B * (D0 * D1 + D1 * D2 + D2 * NUM_CLASSES)
    bytes_accessed = B * (row_in + row_out) + w_bytes

    packed = pl.pallas_call(
        kernel,
        out_shape=jax.ShapeDtypeStruct((B, PACK_W), jnp.float32),
        grid=grid,
        in_specs=[
            pl.BlockSpec((tb, D0), lambda i: (i, 0)),              # x
            pl.BlockSpec((tb, D0), lambda i: (i, 0)),              # n0 (bf16)
            pl.BlockSpec((tb, H1_PAD), lambda i: (i, 0)),          # n1 (bf16, padded)
            pl.BlockSpec((tb, TAIL_PAD), lambda i: (i, 0)),        # n2 (bf16, padded)
            pl.BlockSpec((D0, H1_PAD), lambda i: (0, 0)),          # w1 (VMEM-resident)
            pl.BlockSpec((H1_PAD, TAIL_PAD), lambda i: (0, 0)),    # w2 (VMEM-resident)
            pl.BlockSpec((TAIL_PAD, TAIL_PAD), lambda i: (0, 0)),  # w3 (VMEM-resident)
            pl.BlockSpec((1, TAIL_PAD), lambda i: (0, 0)),         # b3 (VMEM-resident)
        ],
        out_specs=pl.BlockSpec((tb, PACK_W), lambda i: (i, 0)),
        compiler_params=pltpu.CompilerParams(
            dimension_semantics=("parallel",),
            vmem_limit_bytes=vmem_limit),
        cost_estimate=pl.CostEstimate(
            flops=flops, transcendentals=0, bytes_accessed=bytes_accessed),
    )(x, n0, n1, n2, w1p, w2p, w3p, b3p)

    h1 = packed[:, 0:D1]
    h2 = packed[:, H1_PAD:H1_PAD + D2]
    out = packed[:, H1_PAD + OUT_LANE_OFF:H1_PAD + OUT_LANE_OFF + NUM_CLASSES]
    return out, h1, h2


# --------------------------------------------------------------------------
# Init + pure-JAX reference
# --------------------------------------------------------------------------
def init_params(key):
    """PyTorch nn.Linear-style init: U[-1/sqrt(fan_in), +1/sqrt(fan_in)]."""
    k1, k2, k3, k4 = jax.random.split(key, 4)

    def u(k, shape, fan_in):
        bound = 1.0 / (fan_in ** 0.5)
        return jax.random.uniform(k, shape, jnp.float32, -bound, bound)

    w1 = u(k1, (D1, D0), D0)
    w2 = u(k2, (D2, D1), D1)
    w3 = u(k3, (NUM_CLASSES, D2), D2)
    b3 = u(k4, (NUM_CLASSES,), D2)
    return (w1, w2, w3, b3)


def reference_forward(x, params, noise, noise_std, nonlinear=True,
                      mm_dtype=jnp.float32):
    """Pure-JAX mirror of the PyTorch module (noise supplied at padded widths;
    only the live lanes are used).  With mm_dtype=bf16 it also mirrors the
    kernel's matmul precision (f32 accumulation)."""
    w1, w2, w3, b3 = params
    n0, n1, n2 = noise

    def mm(a, w):   # w is PyTorch-layout (out, in)
        return jnp.dot(a.astype(mm_dtype), w.T.astype(mm_dtype),
                       preferred_element_type=jnp.float32)

    xn = x.astype(jnp.float32) + noise_std[0] * n0.astype(jnp.float32)
    h1 = mm(xn, w1)
    if nonlinear:
        h1 = _leaky_relu(h1)
    nh1 = h1 + noise_std[1] * n1[:, :D1].astype(jnp.float32)
    h2 = mm(nh1, w2)
    if nonlinear:
        h2 = _leaky_relu(h2)
    nh2 = h2 + noise_std[2] * n2[:, :D2].astype(jnp.float32)
    out = mm(nh2, w3) + b3
    return out, h1, h2


# --------------------------------------------------------------------------
if __name__ == "__main__":
    key = jax.random.PRNGKey(0)
    kp, kx, kn = jax.random.split(key, 3)

    B = 24
    params = init_params(kp)            # PyTorch-layout f32 params
    prepped = prepare_params(params)    # one-time: transpose / zero-pad / bf16 cast

    x = jax.random.normal(kx, (B, D0), jnp.float32)
    noise = make_noise(kn, B)           # bf16 noise at lane-padded widths
    noise_std = (0.1, 0.05, 0.02)

    # Default tiling: tb=16, grid=2 (second block is ragged: rows 24..31 masked).
    out, h1, h2 = mlp_forward(x, prepped, noise, noise_std, nonlinear=True)
    jax.block_until_ready((out, h1, h2))

    assert out.shape == (B, NUM_CLASSES)
    assert h1.shape == (B, D1)
    assert h2.shape == (B, D2)

    # Tight check vs a reference mirroring the kernel math (bf16 matmul operands,
    # f32 accumulation, same bf16 noise).
    r_out, r_h1, r_h2 = reference_forward(x, params, noise, noise_std,
                                          nonlinear=True, mm_dtype=jnp.bfloat16)
    assert jnp.allclose(out, r_out, atol=1e-4, rtol=1e-4)
    assert jnp.allclose(h1, r_h1, atol=1e-4, rtol=1e-4)
    assert jnp.allclose(h2, r_h2, atol=1e-4, rtol=1e-4)

    # Loose check vs the full-f32 PyTorch-equivalent math (bf16 matmul operands
    # are the deliberate precision trade-off from the perf review).
    f_out, f_h1, f_h2 = reference_forward(x, params, noise, noise_std,
                                          nonlinear=True, mm_dtype=jnp.float32)
    assert jnp.allclose(out, f_out, atol=5e-2, rtol=5e-2)
    assert jnp.allclose(h1, f_h1, atol=5e-2, rtol=5e-2)
    assert jnp.allclose(h2, f_h2, atol=5e-2, rtol=5e-2)

    # Exercise the nonlinear=False branch and a small evenly-dividing tile
    # (tb=8, grid=3, no ragged block).
    out_l, h1_l, h2_l = mlp_forward(x, prepped, noise, noise_std,
                                    nonlinear=False, block_b=8)
    jax.block_until_ready((out_l, h1_l, h2_l))
    l_out, l_h1, l_h2 = reference_forward(x, params, noise, noise_std,
                                          nonlinear=False, mm_dtype=jnp.bfloat16)
    assert jnp.allclose(out_l, l_out, atol=1e-4, rtol=1e-4)
    assert jnp.allclose(h1_l, l_h1, atol=1e-4, rtol=1e-4)
    assert jnp.allclose(h2_l, l_h2, atol=1e-4, rtol=1e-4)

    print("KERNEL_OK")
</pallas_src>

<mosaic_0001>
module attributes {stable_mosaic.version = 11 : i64} {
  func.func @mlp_kernel(%arg0: i32, %arg1: memref<16x444xf32, #tpu.memory_space<vmem>>, %arg2: memref<16x444xbf16, #tpu.memory_space<vmem>>, %arg3: memref<16x256xbf16, #tpu.memory_space<vmem>>, %arg4: memref<16x128xbf16, #tpu.memory_space<vmem>>, %arg5: memref<444x256xbf16, #tpu.memory_space<vmem>>, %arg6: memref<256x128xbf16, #tpu.memory_space<vmem>>, %arg7: memref<128x128xbf16, #tpu.memory_space<vmem>>, %arg8: memref<1x128xf32, #tpu.memory_space<vmem>>, %arg9: memref<16x384xf32, #tpu.memory_space<vmem>>) attributes {dimension_semantics = [#tpu.dimension_semantics<parallel>], iteration_bounds = array<i64: 2>, scalar_prefetch = 0 : i64, scratch_operands = 0 : i64, tpu.core_type = #tpu.core_type<tc>, window_params = [{transform_indices = @transform_0, window_bounds = array<i64: 16, 444>}, {transform_indices = @transform_1, window_bounds = array<i64: 16, 444>}, {transform_indices = @transform_2, window_bounds = array<i64: 16, 256>}, {transform_indices = @transform_3, window_bounds = array<i64: 16, 128>}, {pipeline_mode = #tpu.pipeline_mode<synchronous>, transform_indices = @transform_4, window_bounds = array<i64: 444, 256>}, {pipeline_mode = #tpu.pipeline_mode<synchronous>, transform_indices = @transform_5, window_bounds = array<i64: 256, 128>}, {pipeline_mode = #tpu.pipeline_mode<synchronous>, transform_indices = @transform_6, window_bounds = array<i64: 128, 128>}, {pipeline_mode = #tpu.pipeline_mode<synchronous>, transform_indices = @transform_7, window_bounds = array<i64: 1, 128>}, {transform_indices = @transform_8, window_bounds = array<i64: 16, 384>}]} {
    %c0 = arith.constant 0 : index
    %c0_0 = arith.constant 0 : index
    %0 = vector.load %arg1[%c0, %c0_0] : memref<16x444xf32, #tpu.memory_space<vmem>>, vector<16x444xf32>
    %c0_1 = arith.constant 0 : index
    %c0_2 = arith.constant 0 : index
    %1 = vector.load %arg2[%c0_1, %c0_2] : memref<16x444xbf16, #tpu.memory_space<vmem>>, vector<16x444xbf16>
    %2 = arith.extf %1 : vector<16x444xbf16> to vector<16x444xf32>
    %cst = arith.constant 1.000000e-01 : f32
    %3 = vector.broadcast %cst : f32 to vector<16x444xf32>
    %4 = arith.mulf %3, %2 : vector<16x444xf32>
    %5 = arith.addf %0, %4 : vector<16x444xf32>
    %6 = arith.truncf %5 : vector<16x444xf32> to vector<16x444xbf16>
    %c0_3 = arith.constant 0 : index
    %c0_4 = arith.constant 0 : index
    %7 = vector.load %arg5[%c0_3, %c0_4] : memref<444x256xbf16, #tpu.memory_space<vmem>>, vector<444x256xbf16>
    %cst_5 = arith.constant dense<0.000000e+00> : vector<16x256xf32>
    %8 = tpu.matmul %6, %7, %cst_5 {dimension_numbers = #tpu.dot_dimension_numbers<[1], [0], [0], [1], [0, 0, 1, 1], [], []>} : vector<16x444xbf16>, vector<444x256xbf16>, vector<16x256xf32> -> vector<16x256xf32>
    %cst_6 = arith.constant 0.000000e+00 : f32
    %9 = vector.broadcast %cst_6 : f32 to vector<16x256xf32>
    %10 = arith.cmpf oge, %8, %9 : vector<16x256xf32>
    %cst_7 = arith.constant 1.000000e-01 : f32
    %11 = vector.broadcast %cst_7 : f32 to vector<16x256xf32>
    %12 = arith.mulf %11, %8 : vector<16x256xf32>
    %13 = arith.select %10, %8, %12 : vector<16x256xi1>, vector<16x256xf32>
    %c0_8 = arith.constant 0 : index
    %c0_9 = arith.constant 0 : index
    %14 = vector.load %arg9[%c0_8, %c0_9] : memref<16x384xf32, #tpu.memory_space<vmem>>, vector<16x256xf32>
    tpu.vector_store %arg9[%c0_8, %c0_9], %13 {strides = array<i32>} : memref<16x384xf32, #tpu.memory_space<vmem>>, vector<16x256xf32>,
    %c0_10 = arith.constant 0 : index
    %c0_11 = arith.constant 0 : index
    %15 = vector.load %arg3[%c0_10, %c0_11] : memref<16x256xbf16, #tpu.memory_space<vmem>>, vector<16x256xbf16>
    %16 = arith.extf %15 : vector<16x256xbf16> to vector<16x256xf32>
    %cst_12 = arith.constant 5.000000e-02 : f32
    %17 = vector.broadcast %cst_12 : f32 to vector<16x256xf32>
    %18 = arith.mulf %17, %16 : vector<16x256xf32>
    %19 = arith.addf %13, %18 : vector<16x256xf32>
    %20 = arith.truncf %19 : vector<16x256xf32> to vector<16x256xbf16>
    %c0_13 = arith.constant 0 : index
    %c0_14 = arith.constant 0 : index
    %21 = vector.load %arg6[%c0_13, %c0_14] : memref<256x128xbf16, #tpu.memory_space<vmem>>, vector<256x128xbf16>
    %cst_15 = arith.constant dense<0.000000e+00> : vector<16x128xf32>
    %22 = tpu.matmul %20, %21, %cst_15 {dimension_numbers = #tpu.dot_dimension_numbers<[1], [0], [0], [1], [0, 0, 1, 1], [], []>} : vector<16x256xbf16>, vector<256x128xbf16>, vector<16x128xf32> -> vector<16x128xf32>
    %cst_16 = arith.constant 0.000000e+00 : f32
    %23 = vector.broadcast %cst_16 : f32 to vector<16x128xf32>
    %24 = arith.cmpf oge, %22, %23 : vector<16x128xf32>
    %cst_17 = arith.constant 1.000000e-01 : f32
    %25 = vector.broadcast %cst_17 : f32 to vector<16x128xf32>
    %26 = arith.mulf %25, %22 : vector<16x128xf32>
    %27 = arith.select %24, %22, %26 : vector<16x128xi1>, vector<16x128xf32>
    %c0_18 = arith.constant 0 : index
    %c0_19 = arith.constant 0 : index
    %28 = vector.load %arg4[%c0_18, %c0_19] : memref<16x128xbf16, #tpu.memory_space<vmem>>, vector<16x128xbf16>
    %29 = arith.extf %28 : vector<16x128xbf16> to vector<16x128xf32>
    %cst_20 = arith.constant 2.000000e-02 : f32
    %30 = vector.broadcast %cst_20 : f32 to vector<16x128xf32>
    %31 = arith.mulf %30, %29 : vector<16x128xf32>
    %32 = arith.addf %27, %31 : vector<16x128xf32>
    %33 = arith.truncf %32 : vector<16x128xf32> to vector<16x128xbf16>
    %c0_21 = arith.constant 0 : index
    %c0_22 = arith.constant 0 : index
    %34 = vector.load %arg7[%c0_21, %c0_22] : memref<128x128xbf16, #tpu.memory_space<vmem>>, vector<128x128xbf16>
    %cst_23 = arith.constant dense<0.000000e+00> : vector<16x128xf32>
    %35 = tpu.matmul %33, %34, %cst_23 {dimension_numbers = #tpu.dot_dimension_numbers<[1], [0], [0], [1], [0, 0, 1, 1], [], []>} : vector<16x128xbf16>, vector<128x128xbf16>, vector<16x128xf32> -> vector<16x128xf32>
    %c0_24 = arith.constant 0 : index
    %c0_25 = arith.constant 0 : index
    %36 = vector.load %arg8[%c0_24, %c0_25] : memref<1x128xf32, #tpu.memory_space<vmem>>, vector<1x128xf32>
    %37 = vector.broadcast %36 : vector<1x128xf32> to vector<16x128xf32>
    %38 = arith.addf %35, %37 : vector<16x128xf32>
    %39 = arith.addf %27, %38 : vector<16x128xf32>
    %c0_26 = arith.constant 0 : index
    %c256 = arith.constant 256 : index
    %40 = vector.load %arg9[%c0_26, %c256] : memref<16x384xf32, #tpu.memory_space<vmem>>, vector<16x128xf32>
    tpu.vector_store %arg9[%c0_26, %c256], %39 {strides = array<i32>} : memref<16x384xf32, #tpu.memory_space<vmem>>, vector<16x128xf32>,
    return
  }
  func.func @transform_0(%arg0: i32) -> (i32, i32) {
    %c0_i32 = arith.constant 0 : i32
    %c0_i32_0 = arith.constant 0 : i32
    return %arg0, %c0_i32 : i32, i32
  }
  func.func @transform_1(%arg0: i32) -> (i32, i32) {
    %c0_i32 = arith.constant 0 : i32
    %c0_i32_0 = arith.constant 0 : i32
    return %arg0, %c0_i32 : i32, i32
  }
  func.func @transform_2(%arg0: i32) -> (i32, i32) {
    %c0_i32 = arith.constant 0 : i32
    %c0_i32_0 = arith.constant 0 : i32
    return %arg0, %c0_i32 : i32, i32
  }
  func.func @transform_3(%arg0: i32) -> (i32, i32) {
    %c0_i32 = arith.constant 0 : i32
    %c0_i32_0 = arith.constant 0 : i32
    return %arg0, %c0_i32 : i32, i32
  }
  func.func @transform_4(%arg0: i32) -> (i32, i32) {
    %c0_i32 = arith.constant 0 : i32
    %c0_i32_0 = arith.constant 0 : i32
    %c0_i32_1 = arith.constant 0 : i32
    return %c0_i32, %c0_i32_0 : i32, i32
  }
  func.func @transform_5(%arg0: i32) -> (i32, i32) {
    %c0_i32 = arith.constant 0 : i32
    %c0_i32_0 = arith.constant 0 : i32
    %c0_i32_1 = arith.constant 0 : i32
    return %c0_i32, %c0_i32_0 : i32, i32
  }
  func.func @transform_6(%arg0: i32) -> (i32, i32) {
    %c0_i32 = arith.constant 0 : i32
    %c0_i32_0 = arith.constant 0 : i32
    %c0_i32_1 = arith.constant 0 : i32
    return %c0_i32, %c0_i32_0 : i32, i32
  }
  func.func @transform_7(%arg0: i32) -> (i32, i32) {
    %c0_i32 = arith.constant 0 : i32
    %c0_i32_0 = arith.constant 0 : i32
    %c0_i32_1 = arith.constant 0 : i32
    return %c0_i32, %c0_i32_0 : i32, i32
  }
  func.func @transform_8(%arg0: i32) -> (i32, i32) {
    %c0_i32 = arith.constant 0 : i32
    %c0_i32_0 = arith.constant 0 : i32
    return %arg0, %c0_i32 : i32, i32
  }
}

</mosaic_0001>

<bundles_post_ra>
// kernel: tpu_custom_call.1
= control target key start
LH: loop header
LB: loop body
LE: loop exit
PB: predicated region body
PF: predicated region fallthrough
CT: control target
= control target key end

     0   :  { %s2964_s0 = inlined_call_operand.hbm [shape: f32[24,444], index: 0, kind: input, shape index: {}]   ;;  %s2965_s1 = inlined_call_operand.hbm [shape: bf16[24,444], index: 1, kind: input, shape index: {}]   ;;  %s2966_s2 = inlined_call_operand.hbm [shape: bf16[24,256], index: 2, kind: input, shape index: {}]   ;;  %s2967_s3 = inlined_call_operand.hbm [shape: bf16[24,128], index: 3, kind: input, shape index: {}]   ;;  %s2968_s4 = inlined_call_operand.hbm [shape: bf16[444,256], index: 4, kind: input, shape index: {}]   ;;  %s2969_s5 = inlined_call_operand.hbm [shape: bf16[256,128], index: 5, kind: input, shape index: {}]   ;;  %s2970_s6 = inlined_call_operand.hbm [shape: bf16[128,128], index: 6, kind: input, shape index: {}]   ;;  %s2971_s7 = inlined_call_operand.vmem [shape: f32[1,128], index: 7, kind: input, shape index: {}]   ;;  %s2972_s8 = inlined_call_operand.hbm [shape: f32[24,384], index: 8, kind: output, shape index: {}]  }
   0x1   :  { %2982 = sst [smem:[#allocation25_spill]] %s2969_s5 }
   0x2   :  { %13 = vsyncpa [#allocation3], 0 }
   0x3   :  { %15 = vsyncpa [#allocation3 + $0x1], 0 }
   0x4   :  { %16 = vsyncpa [#allocation6], 0 }
   0x5   :  { %18 = vsyncpa [#allocation6 + $0x1], 0 }
   0x6   :  { %19 = vsyncpa [#allocation9], 0 }
   0x7   :  { %21 = vsyncpa [#allocation9 + $0x1], 0 }
   0x8   :  { %22 = vsyncpa [#allocation12], 0 }
   0x9   :  { %23 = vsyncpa [#allocation4], 0 }
   0xa   :  { %25 = vsyncpa [#allocation4 + $0x1], 0  ;;  %s2511_s27 = smov 0   ;;  %s2513_s28 = smov 0  }
   0xb   :  { %s2515_s29 = smov 0   ;;  %s2517_s30 = smov 0  }
   0xc LB: > { %2983 = sst [smem:[#allocation21_spill]] %s2430_s27  ;;  %s2532_s9 = sadd.s32 4294967295, %s2442_s30   ;;  %s2442_s30 = sphi %s2517_s30, %s3011_s30   ;;  %s2438_s29 = sphi %s2515_s29, %s3015_s29   ;;  %s2434_s28 = sphi %s2513_s28, %s3014_s28   ;;  %s2430_s27 = sphi %s2511_s27, %s3013_s27  }
   0xd   : > { %s1540_s10 = sadd.s32 4294967294, %s2442_s30   ;;  %s2536_s11 = sadd.s32 1, %s2442_s30  }
   0xe   : > { %2984 = sst [smem:[#allocation22_spill]] %s2536_s11  ;;  %s38_s12 = sadd.s32 1, %s2438_s29 }
   0xf   : > { %s35_s13 = ssub.s32 %s2442_s30, %s2536_s11  ;;  %p45_p0 = scmp.ne.s32.totalorder %s2438_s29, %s2434_s28 }
  0x10   : > { %p36_p1 = scmp.eq.s32.totalorder %s35_s13, 0  ;;  %p46_p2 = scmp.eq.s32.totalorder %s2442_s30, 0 }
  0x11   : > { %p51_p3 = scmp.ne.s32.totalorder %s2434_s28, %s2430_s27  ;;  %p2979_p4 = scmp.eq.s32.totalorder %s2532_s9, 0 }
  0x12   : > { %s2548_s14 = scalar_select %p36_p1, %s2438_s29, %s38_s12  }
  0x13   : > { %p2550_p5 = por %p46_p2, %p45_p0  ;;  %p2556_p6 = por %p2979_p4, %p51_p3 }
  0x14   : > { %2985 = sst [smem:[#allocation23_spill]] %s2548_s14  ;;  %p237_p7 = scmp.eq.s32.totalorder %s2532_s9, 1 }
  0x15   : > { %p243_p8 = scmp.eq.s32.totalorder %s1540_s10, 1  ;;  %p1541_p9 = scmp.ge.s32.totalorder %s2442_s30, 1 }
  0x16   : > { %p250_p10 = scmp.lt.s32.totalorder %s2442_s30, 3  ;;  %p2563_p11 = por %p237_p7, %p45_p0 }
  0x17   : > { %p2567_p12 = por %p243_p8, %p51_p3  ;;  %s2992_s5 = sld [smem:[#allocation25_spill]] }
  0x18   : > { %s2988_s17 = scalar_select %p2563_p11, 1, 0 }
  0x19   : > { %s2989_s18 = scalar_select %p2567_p12, 1, 0 }
  0x1a   : > { %p2571_p13 = pnand %p1541_p9, %p250_p10  ;;  %s2444_s23 = smov [#allocation11]  }
  0x1b   : > { %2990 = sst [smem:[#allocation24_spill]] %s2989_s18  ;;  %s277_s24 = sshll.u32 %s2444_s23, 4  ;;  %s278_s24 = int_to_ptr.vmem [resolvable:$true] %s277_s24 }
  0x1c   : > { %p2032_p1 = pneg %p2571_p13  ;;  %s261_s12 = sshll.u32 %s2968_s4, 4  ;;  %s262_s12 = int_to_ptr.hbm [resolvable:$true] %s261_s12 }
  0x1d   : > { %s275_s22 = sshll.u32 %s2992_s5, 4  ;;  %s2445_s13 = smov 64   ;;  %s276_s22 = int_to_ptr.hbm [resolvable:$true] %s275_s22 }
  0x1e   : > { %p2582_p0 = pnand %p2032_p1, %p2979_p4  ;;  %s2446_s20 = smov 4  }
  0x1f   : > { %s2447_s21 = smov [#allocation10]   ;;  %s289_s11 = sshll.u32 %s2970_s6, 4  ;;  %s290_s11 = int_to_ptr.hbm [resolvable:$true] %s289_s11 }
  0x20   : > { %2038 = dma.hbm_to_vmem [thread:$0]  (!%p2582_p0), %s276_s22, 2048, %s278_s24, [#allocation12], %s2445_s13, %s2445_s13, %s2446_s20  }
  0x21   : > { %s263_s23 = sshll.u32 %s2447_s21, 4  ;;  %s2448_s18 = smov 128   ;;  %s264_s23 = int_to_ptr.vmem [resolvable:$true] %s263_s23 }
  0x22   : > { %s2449_s27 = smov 8   ;;  %s2450_s26 = smov [#allocation13]  }
  0x23   : > { %2035 = dma.hbm_to_vmem [thread:$0]  (!%p2582_p0), %s262_s12, 7168, %s264_s23, [#allocation9], %s2448_s18, %s2448_s18, %s2449_s27  }
  0x24   : > { %s291_s10 = sshll.u32 %s2450_s26, 4  ;;  %p2977_p2 = scmp.ge.s32.totalorder %s2442_s30, 2  ;;  %s292_s10 = int_to_ptr.vmem [resolvable:$true] %s291_s10 }
  0x25   : > { %2041 = dma.hbm_to_vmem [thread:$0]  (!%p2582_p0), %s290_s11, 1024, %s292_s10, [#allocation12], %s2445_s13, %s2445_s13, %s2446_s20  }
  0x26   : > { %304 = sbr.rel (%p2977_p2) target bundleno = 190 (0xbe), region = 32 }
  0x2b   : > { %307 = sbr.rel (!%p2550_p5) target bundleno = 80 (0x50), region = 36  ;;  %s308_s5 = sand.u32 (%p2550_p5), 1, %s2438_s29  }
  0x2c   : > { %s1547_s14 = sshll.u32 (%p2550_p5), %s2442_s30, 1  ;;  %s1546_s22 = sshll.u32 (%p2550_p5), %s308_s5, 6 }
  0x2d   : > { %s314_s27 = ssub.s32 (%p2550_p5), 3, %s1547_s14  ;;  %s2608_s25 = scalar_lea.sflag (%p2550_p5), [#allocation3], %s308_s5 }
  0x2e   : > { %p315_p3 = scmp.lt.s32.totalorder (%p2550_p5), %s314_s27, 2  ;;  %s312_s12 = scalar_lea.vmem (%p2550_p5), [#allocation2], %s1546_s22 }
  0x30   : > { %s3017_s27 = smov (!%p315_p3, %s314_s27), 2 }
  0x31   : > { %s1919_s18 = sshll.u32 %s3017_s27, 5 }
  0x32   : > { %s319_s11 = ssub.s32 64, %s1919_s18 }
  0x33   : > { %s320_s24 = sshll.u32 %s319_s11, 4 }
  0x34   : > { %321 = vsyncadd %s2608_s25, %s320_s24  ;;  %p2611_p7 = scmp.ne.s32.totalorder %s1919_s18, 0  ;;  %s1921_s20 = sshll.u32 %s2442_s30, 6 }
  0x35   : > { %s325_s26 = scalar_lea.hbm %s2964_s0, %s1921_s20  ;;  %s2619_s10 = sshll.u32 %s312_s12, 4  ;;  %s330_s10 = int_to_ptr.vmem [resolvable:$true] %s2619_s10 }
  0x36   : > { %s327_s5 = sshll.u32 %s325_s26, 4  ;;  %s2978_s14 = sshll.u32 %s3017_s27, 9  ;;  %s2622_s5 = int_to_ptr.hbm [resolvable:$true] %s327_s5 }
  0x37   : > { %s2193_s22 = sshra.s32 %s2622_s5, 4  ;;  %s2195_s18 = sshrl.u32 %s2978_s14, 4  ;;  %s2194_s22 = int_to_ptr.hbm [resolvable:$true] %s2193_s22 }
  0x38   : > { %s2200_s11 = scalar_lea.hbm %s2194_s22, %s2195_s18  ;;  %s2204_s12 = scalar_lea.hbm %s2964_s0, 96 }
  0x39   : > { %p2201_p8 = scmp.ne.s32.totalorder %s2194_s22, %s2200_s11  ;;  %p2205_p1 = scmp.lt.s32.totalorder %s2194_s22, %s2964_s0 }
  0x3a   : > { %p2206_p0 = scmp.lt.s32.totalorder %s2204_s12, %s2200_s11 }
  0x3b   : > { %p2202_p9 = pnand %p2201_p8, %p2611_p7 }
  0x3c   : > { %p2207_p3 = por %p2206_p0, %p2205_p1 }
  0x3d   : > { %p2203_p10 = pneg %p2202_p9 }
  0x3f   : > { %p2208_p2 = pnand %p2207_p3, %p2203_p10 }
  0x41   : > { %2211 = shalt.err (!%p2208_p2)
}
  0x42   : > { %s2212_s26 = sshra.s32 %s330_s10, 4  ;;  %s2451_s24 = smov [#allocation2]   ;;  %s2213_s26 = int_to_ptr.vmem [resolvable:$true] %s2212_s26 }
  0x43   : > { %s2219_s14 = scalar_lea.vmem %s2213_s26, %s2195_s18  ;;  %s2223_s20 = scalar_lea.vmem %s2451_s24, 128 }
  0x44   : > { %p2220_p8 = scmp.ne.s32.totalorder %s2213_s26, %s2219_s14  ;;  %p2225_p12 = scmp.lt.s32.totalorder %s2223_s20, %s2219_s14 }
  0x46   : > { %p2221_p9 = pnand %p2220_p8, %p2611_p7 }
  0x48   : > { %p2222_p4 = pneg %p2221_p9 }
  0x4a   : > { %p2227_p11 = pnand %p2225_p12, %p2222_p4 }
  0x4c   : > { %2230 = shalt.err (!%p2227_p11)
}
  0x4d   : > { %s2452_s22 = smov 512   ;;  %s2453_s11 = smov 32  }
  0x4e   : > { %s2995_s12 = sshll.u32 %s3017_s27, 9 }
  0x4f   : > { %335 = dma.hbm_to_vmem [thread:$0]  (%p2611_p7), %s2622_s5, %s2995_s12, %s330_s10, %s2608_s25, %s2452_s22, %s2452_s22, %s2453_s11  }
  0x50 PF: > { %338 = sbr.rel (!%p2550_p5) target bundleno = 117 (0x75), region = 40  ;;  %s339_s14 = sand.u32 (%p2550_p5), 1, %s2442_s30  }
  0x51   : > { %s341_s18 = sand.u32 (%p2550_p5), 1, %s2438_s29   ;;  %s1556_s23 = sshll.u32 (%p2550_p5), %s2442_s30, 1 }
  0x52   : > { %s1555_s21 = sshll.u32 (%p2550_p5), %s341_s18, 5  ;;  %s345_s26 = ssub.s32 (%p2550_p5), 3, %s1556_s23 }
  0x53   : > { %p346_p4 = scmp.lt.s32.totalorder (%p2550_p5), %s345_s26, 2  ;;  %s2656_s25 = scalar_lea.sflag (%p2550_p5), [#allocation6], %s339_s14 }
  0x54   : > { %s343_s10 = scalar_lea.vmem (%p2550_p5), [#allocation5], %s1555_s21 }
  0x55   : > { %s3019_s26 = smov (!%p346_p4, %s345_s26), 2 }
  0x56   : > { %s1922_s13 = sshll.u32 %s3019_s26, 4 }
  0x57   : > { %s350_s24 = ssub.s32 32, %s1922_s13 }
  0x58   : > { %s351_s27 = sshll.u32 %s350_s24, 4 }
  0x59   : > { %352 = vsyncadd %s2656_s25, %s351_s27  ;;  %p2659_p11 = scmp.ne.s32.totalorder %s1922_s13, 0  ;;  %s1924_s20 = sshll.u32 %s2442_s30, 5 }
  0x5a   : > { %s356_s12 = scalar_lea.hbm %s2965_s1, %s1924_s20  ;;  %s2667_s18 = sshll.u32 %s343_s10, 4  ;;  %s361_s18 = int_to_ptr.vmem [resolvable:$true] %s2667_s18 }
  0x5b   : > { %s358_s14 = sshll.u32 %s356_s12, 4  ;;  %s2980_s21 = sshll.u32 %s3019_s26, 8  ;;  %s2670_s14 = int_to_ptr.hbm [resolvable:$true] %s358_s14 }
  0x5c   : > { %s2232_s23 = sshra.s32 %s2670_s14, 4  ;;  %s2234_s13 = sshrl.u32 %s2980_s21, 4  ;;  %s2233_s23 = int_to_ptr.hbm [resolvable:$true] %s2232_s23 }
  0x5d   : > { %s2239_s24 = scalar_lea.hbm %s2233_s23, %s2234_s13  ;;  %s2243_s10 = scalar_lea.hbm %s2965_s1, 48 }
  0x5e   : > { %p2240_p12 = scmp.ne.s32.totalorder %s2233_s23, %s2239_s24  ;;  %p2244_p10 = scmp.lt.s32.totalorder %s2233_s23, %s2965_s1 }
  0x5f   : > { %p2245_p1 = scmp.lt.s32.totalorder %s2243_s10, %s2239_s24 }
  0x60   : > { %p2241_p2 = pnand %p2240_p12, %p2659_p11 }
  0x61   : > { %p2246_p0 = por %p2245_p1, %p2244_p10 }
  0x62   : > { %p2242_p7 = pneg %p2241_p2 }
  0x64   : > { %p2247_p3 = pnand %p2246_p0, %p2242_p7 }
  0x66   : > { %2250 = shalt.err (!%p2247_p3)
}
  0x67   : > { %s2251_s12 = sshra.s32 %s361_s18, 4  ;;  %s2454_s27 = smov [#allocation5]   ;;  %s2252_s12 = int_to_ptr.vmem [resolvable:$true] %s2251_s12 }
  0x68   : > { %s2258_s21 = scalar_lea.vmem %s2252_s12, %s2234_s13  ;;  %s2262_s20 = scalar_lea.vmem %s2454_s27, 64 }
  0x69   : > { %p2259_p8 = scmp.ne.s32.totalorder %s2252_s12, %s2258_s21  ;;  %p2264_p12 = scmp.lt.s32.totalorder %s2262_s20, %s2258_s21 }
  0x6b   : > { %p2260_p9 = pnand %p2259_p8, %p2659_p11 }
  0x6d   : > { %p2261_p4 = pneg %p2260_p9 }
  0x6f   : > { %p2266_p2 = pnand %p2264_p12, %p2261_p4 }
  0x71   : > { %2269 = shalt.err (!%p2266_p2)
}
  0x72   : > { %s2455_s23 = smov 256   ;;  %s2456_s24 = smov 16  }
  0x73   : > { %s2997_s10 = sshll.u32 %s3019_s26, 8 }
  0x74   : > { %366 = dma.hbm_to_vmem [thread:$0]  (%p2659_p11), %s2670_s14, %s2997_s10, %s361_s18, %s2656_s25, %s2455_s23, %s2455_s23, %s2456_s24  }
  0x75 PF: > { %369 = sbr.rel (!%p2550_p5) target bundleno = 154 (0x9a), region = 44  ;;  %s370_s21 = sand.u32 (%p2550_p5), 1, %s2442_s30  }
  0x76   : > { %s372_s13 = sand.u32 (%p2550_p5), 1, %s2438_s29   ;;  %s1565_s11 = sshll.u32 (%p2550_p5), %s2442_s30, 1 }
  0x77   : > { %s1564_s22 = sshll.u32 (%p2550_p5), %s372_s13, 4  ;;  %s376_s12 = ssub.s32 (%p2550_p5), 3, %s1565_s11 }
  0x78   : > { %p377_p7 = scmp.lt.s32.totalorder (%p2550_p5), %s376_s12, 2  ;;  %s2704_s25 = scalar_lea.sflag (%p2550_p5), [#allocation6], %s370_s21 }
  0x79   : > { %s374_s18 = scalar_lea.vmem (%p2550_p5), [#allocation7], %s1564_s22 }
  0x7a   : > { %s3021_s12 = smov (!%p377_p7, %s376_s12), 2 }
  0x7b   : > { %s1925_s5 = sshll.u32 %s3021_s12, 3 }
  0x7c   : > { %s381_s27 = ssub.s32 16, %s1925_s5 }
  0x7d   : > { %s382_s26 = sshll.u32 %s381_s27, 4 }
  0x7e   : > { %383 = vsyncadd %s2704_s25, %s382_s26  ;;  %p2707_p11 = scmp.ne.s32.totalorder %s1925_s5, 0  ;;  %s1927_s20 = sshll.u32 %s2442_s30, 4 }
  0x7f   : > { %s387_s10 = scalar_lea.hbm %s2966_s2, %s1927_s20  ;;  %s2715_s13 = sshll.u32 %s374_s18, 4  ;;  %s392_s13 = int_to_ptr.vmem [resolvable:$true] %s2715_s13 }
  0x80   : > { %s389_s21 = sshll.u32 %s387_s10, 4  ;;  %s2981_s22 = sshll.u32 %s3021_s12, 7  ;;  %s2718_s21 = int_to_ptr.hbm [resolvable:$true] %s389_s21 }
  0x81   : > { %s2271_s11 = sshra.s32 %s2718_s21, 4  ;;  %s2273_s5 = sshrl.u32 %s2981_s22, 4  ;;  %s2272_s11 = int_to_ptr.hbm [resolvable:$true] %s2271_s11 }
  0x82   : > { %s2278_s27 = scalar_lea.hbm %s2272_s11, %s2273_s5  ;;  %s2282_s18 = scalar_lea.hbm %s2966_s2, 24 }
  0x83   : > { %p2279_p10 = scmp.ne.s32.totalorder %s2272_s11, %s2278_s27  ;;  %p2283_p3 = scmp.lt.s32.totalorder %s2272_s11, %s2966_s2 }
  0x84   : > { %p2284_p8 = scmp.lt.s32.totalorder %s2282_s18, %s2278_s27 }
  0x85   : > { %p2280_p1 = pnand %p2279_p10, %p2707_p11 }
  0x86   : > { %p2285_p9 = por %p2284_p8, %p2283_p3 }
  0x87   : > { %p2281_p0 = pneg %p2280_p1 }
  0x89   : > { %p2286_p4 = pnand %p2285_p9, %p2281_p0 }
  0x8b   : > { %2289 = shalt.err (!%p2286_p4)
}
  0x8c   : > { %s2290_s10 = sshra.s32 %s392_s13, 4  ;;  %s2457_s26 = smov [#allocation7]   ;;  %s2291_s10 = int_to_ptr.vmem [resolvable:$true] %s2290_s10 }
  0x8d   : > { %s2297_s22 = scalar_lea.vmem %s2291_s10, %s2273_s5  ;;  %s2301_s20 = scalar_lea.vmem %s2457_s26, 32 }
  0x8e   : > { %p2298_p12 = scmp.ne.s32.totalorder %s2291_s10, %s2297_s22  ;;  %p2303_p10 = scmp.lt.s32.totalorder %s2301_s20, %s2297_s22 }
  0x90   : > { %p2299_p2 = pnand %p2298_p12, %p2707_p11 }
  0x92   : > { %p2300_p7 = pneg %p2299_p2 }
  0x94   : > { %p2305_p1 = pnand %p2303_p10, %p2300_p7 }
  0x96   : > { %2308 = shalt.err (!%p2305_p1)
}
  0x97   : > { %s2458_s11 = smov 128   ;;  %s2459_s27 = smov 8  }
  0x98   : > { %s2999_s18 = sshll.u32 %s3021_s12, 7 }
  0x99   : > { %397 = dma.hbm_to_vmem [thread:$0]  (%p2707_p11), %s2718_s21, %s2999_s18, %s392_s13, %s2704_s25, %s2458_s11, %s2458_s11, %s2459_s27  }
  0x9a PF: > { %400 = sbr.rel (!%p2550_p5) target bundleno = 190 (0xbe), region = 48  ;;  %s401_s22 = sand.u32 (%p2550_p5), 1, %s2442_s30  }
  0x9b   : > { %s403_s5 = sand.u32 (%p2550_p5), 1, %s2438_s29   ;;  %s1574_s24 = sshll.u32 (%p2550_p5), %s2442_s30, 1 }
  0x9c   : > { %s1573_s23 = sshll.u32 (%p2550_p5), %s403_s5, 3  ;;  %s407_s10 = ssub.s32 (%p2550_p5), 3, %s1574_s24 }
  0x9d   : > { %p408_p0 = scmp.lt.s32.totalorder (%p2550_p5), %s407_s10, 2  ;;  %s2752_s25 = scalar_lea.sflag (%p2550_p5), [#allocation9], %s401_s22 }
  0x9e   : > { %s405_s15 = scalar_lea.vmem (%p2550_p5), [#allocation8], %s1573_s23 }
  0x9f   : > { %s3023_s10 = smov (!%p408_p0, %s407_s10), 2 }
  0xa0   : > { %s1575_s14 = sshll.u32 %s3023_s10, 2 }
  0xa1   : > { %s411_s26 = ssub.s32 8, %s1575_s14 }
  0xa2   : > { %s412_s12 = sshll.u32 %s411_s26, 4 }
  0xa3   : > { %413 = vsyncadd %s2752_s25, %s412_s12  ;;  %p2755_p5 = scmp.ne.s32.totalorder %s1575_s14, 0  ;;  %s1928_s21 = sshll.u32 %s2442_s30, 3 }
  0xa4   : > { %s416_s27 = scalar_lea.hbm %s2967_s3, %s1928_s21  ;;  %s2763_s18 = sshll.u32 %s405_s15, 4  ;;  %s421_s18 = int_to_ptr.vmem [resolvable:$true] %s2763_s18 }
  0xa5   : > { %s418_s22 = sshll.u32 %s416_s27, 4  ;;  %s1579_s5 = sshll.u32 %s3023_s10, 6  ;;  %s2766_s22 = int_to_ptr.hbm [resolvable:$true] %s418_s22 }
  0xa6   : > { %s2310_s23 = sshra.s32 %s2766_s22, 4  ;;  %s2312_s24 = sshrl.u32 %s1579_s5, 4  ;;  %s2311_s23 = int_to_ptr.hbm [resolvable:$true] %s2310_s23 }
  0xa7   : > { %s2317_s14 = scalar_lea.hbm %s2311_s23, %s2312_s24  ;;  %s2321_s15 = scalar_lea.hbm %s2967_s3, 12 }
  0xa8   : > { %p2318_p11 = scmp.ne.s32.totalorder %s2311_s23, %s2317_s14  ;;  %p2322_p9 = scmp.lt.s32.totalorder %s2311_s23, %s2967_s3 }
  0xa9   : > { %p2323_p4 = scmp.lt.s32.totalorder %s2321_s15, %s2317_s14 }
  0xaa   : > { %p2319_p3 = pnand %p2318_p11, %p2755_p5 }
  0xab   : > { %p2324_p12 = por %p2323_p4, %p2322_p9 }
  0xac   : > { %p2320_p8 = pneg %p2319_p3 }
  0xae   : > { %p2325_p2 = pnand %p2324_p12, %p2320_p8 }
  0xb0   : > { %2328 = shalt.err (!%p2325_p2)
}
  0xb1   : > { %s2329_s11 = sshra.s32 %s421_s18, 4  ;;  %s2460_s26 = smov [#allocation8]   ;;  %s2330_s11 = int_to_ptr.vmem [resolvable:$true] %s2329_s11 }
  0xb2   : > { %s2336_s27 = scalar_lea.vmem %s2330_s11, %s2312_s24  ;;  %s2340_s12 = scalar_lea.vmem %s2460_s26, 16 }
  0xb3   : > { %p2337_p7 = scmp.ne.s32.totalorder %s2330_s11, %s2336_s27  ;;  %p2342_p0 = scmp.lt.s32.totalorder %s2340_s12, %s2336_s27 }
  0xb5   : > { %p2338_p10 = pnand %p2337_p7, %p2755_p5 }
  0xb7   : > { %p2339_p1 = pneg %p2338_p10 }
  0xb9   : > { %p2344_p11 = pnand %p2342_p0, %p2339_p1 }
  0xbb   : > { %2347 = shalt.err (!%p2344_p11)
}
  0xbc   : > { %s2461_s23 = smov 64   ;;  %s2462_s14 = smov 4  }
  0xbd   : > { %426 = dma.hbm_to_vmem [thread:$0]  (%p2755_p5), %s2766_s22, %s1579_s5, %s421_s18, %s2752_s25, %s2461_s23, %s2461_s23, %s2462_s14  }
  0xbe PF: > { %432 = sbr.rel (%p2571_p13) target bundleno = 747 (0x2eb), region = 52  ;;  %s2795_s24 = sand.u32 (!%p2571_p13), 1, %s2434_s28  }
  0xbf   : > { %s1581_s15 = sshll.u32 (!%p2571_p13), %s2795_s24, 6  ;;  %s435_s21 = scalar_lea.sflag (!%p2571_p13), [#allocation3], %s2795_s24 }
  0xc0   : > { %s2799_s20 = scalar_lea.vmem (!%p2571_p13), [#allocation2], %s1581_s15 }
  0xc3   : > { %2405 = dma.done.wait (%p2556_p6), %s435_s21, 1024  }
  0xc4   : > { %2407 = vsyncadd (%p2556_p6), %s435_s21, 4294966272  ;;  %s444_s19 = sand.u32 1, %s2532_s9   ;;  %s1582_s10 = sshll.u32 %s2795_s24, 5 }
  0xc5   : > { %s445_s25 = scalar_lea.sflag [#allocation6], %s444_s19  ;;  %s2807_s13 = scalar_lea.vmem [#allocation5], %s1582_s10 }
  0xc6   : > { %2409 = dma.done.wait (%p2556_p6), %s445_s25, 768  }
  0xc7   : > { %2411 = vsyncadd (%p2556_p6), %s445_s25, 4294966528  ;;  %s1583_s18 = sshll.u32 %s2795_s24, 4  ;;  %s1584_s22 = sshll.u32 %s2795_s24, 3 }
  0xc8   : > { %s2815_s5 = scalar_lea.vmem [#allocation7], %s1583_s18  ;;  %s465_s11 = scalar_lea.sflag [#allocation9], %s444_s19 }
  0xc9   : > { %s2817_s27 = scalar_lea.vmem [#allocation8], %s1584_s22 }
  0xca   : > { %2413 = dma.done.wait (%p2556_p6), %s465_s11, 128  }
  0xcb   : > { %2415 = vsyncadd (%p2556_p6), %s465_s11, 4294967168  ;;  %p3001_p13 = scmp.eq.s32.totalorder %s2532_s9, 0 }
  0xcd   : > { %2417 = dma.done.wait (%p3001_p13), [#allocation9], 7168   ;;  %p3002_p5 = pmov %p3001_p13 }
  0xcf   : > { %2419 = vsyncadd (%p3002_p5), [#allocation9], 4294960128  ;;  %p3003_p3 = pmov %p3002_p5 }
  0xd1   : > { %2421 = dma.done.wait (%p3003_p3), [#allocation12], 3072   ;;  %p3004_p8 = pmov %p3003_p3 }
  0xd2   : > { %vm940_vm0 = vcmask 1045504   ;;  %v1646_v0 = vld [vmem:[#allocation10 + $0x70] sm:$0xf]  ;;  %v1944_v1 = vld [vmem:[#allocation10 + $0x74] sm:$0xf0]  ;;  %vm936_vm1 = vcmask 490496  }
  0xd3   : > { %2423 = vsyncadd (%p3004_p8), [#allocation12], 4294964224  ;;  %v1710_v2 = vld [vmem:[#allocation10 + $0xf0] sm:$0xf]  ;;  %v1647_v3 = vor.u32 %v1944_v1, %v1646_v0  ;;  %v1960_v4 = vld [vmem:[#allocation10 + $0xf4] sm:$0xf0] }
  0xd4   : > { %v1774_v5 = vld [vmem:[#allocation10 + $0x170] sm:$0xf]  ;;  %v1976_v6 = vld [vmem:[#allocation10 + $0x174] sm:$0xf0]  ;;  %v1711_v7 = vor.u32 %v1960_v4, %v1710_v2  ;;  %v1638_v11 = vld [vmem:[#allocation10 + $0x60] sm:$0xf] }
  0xd5   : > { %v1775_v8 = vor.u32 %v1976_v6, %v1774_v5  ;;  %v1806_v9 = vld [vmem:[#allocation10 + $0x1b0] sm:$0xf]  ;;  %v1984_v10 = vld [vmem:[#allocation10 + $0x1b4] sm:$0x30]  ;;  %947 = vmatpush.bf16.msra.mxu0 %v1647_v3  ;;  %v1942_v13 = vld [vmem:[#allocation10 + $0x64] sm:$0xf0] }
  0xd6   : > { %v1807_v12 = vor.u32 %v1984_v10, %v1806_v9  ;;  %v1702_v14 = vld [vmem:[#allocation10 + $0xe0] sm:$0xf]  ;;  %v1958_v15 = vld [vmem:[#allocation10 + $0xe4] sm:$0xf0]  ;;  %961 = vmatpush.bf16.msra.mxu1 %v1711_v7  ;;  %v1639_v16 = vor.u32 %v1942_v13, %v1638_v11  ;;  %v1630_v24 = vld [vmem:[#allocation10 + $0x50] sm:$0xf] }
  0xd7   : > { %975 = vmatpush.bf16.msra.mxu2 %v1775_v8  ;;  %v1703_v17 = vor.u32 %v1958_v15, %v1702_v14  ;;  %v1766_v18 = vld [vmem:[#allocation10 + $0x160] sm:$0xf]  ;;  %v1974_v19 = vld [vmem:[#allocation10 + $0x164] sm:$0xf0]  ;;  %v1940_v26 = vld [vmem:[#allocation10 + $0x54] sm:$0xf0] }
  0xd8   : > { %v1798_v20 = vld [vmem:[#allocation10 + $0x1a0] sm:$0xf]  ;;  %v942_v21 = vsel %vm940_vm0, %v1807_v12, 0  ;;  %v1767_v22 = vor.u32 %v1974_v19, %v1766_v18  ;;  %v1982_v23 = vld [vmem:[#allocation10 + $0x1a4] sm:$0xf0]  ;;  %v1631_v29 = vor.u32 %v1940_v26, %v1630_v24  ;;  %s2013_s16 = smul.u32 48, %s2795_s24 }
  0xd9   : > { %993 = vmatpush.bf16.msra.mxu3 %v942_v21  ;;  %v1799_v25 = vor.u32 %v1982_v23, %v1798_v20  ;;  %v1694_v27 = vld [vmem:[#allocation10 + $0xd0] sm:$0xf]  ;;  %v1956_v28 = vld [vmem:[#allocation10 + $0xd4] sm:$0xf0]  ;;  %948 = vmatpush.bf16.msra.mxu0 %v1639_v16  ;;  %v1622_v36 = vld [vmem:[#allocation10 + $0x40] sm:$0xf] }
  0xda   : > { %v1758_v30 = vld [vmem:[#allocation10 + $0x150] sm:$0xf]  ;;  %v1972_v31 = vld [vmem:[#allocation10 + $0x154] sm:$0xf0]  ;;  %962 = vmatpush.bf16.msra.mxu1 %v1703_v17  ;;  %v1695_v33 = vor.u32 %v1956_v28, %v1694_v27  ;;  %v1938_v37 = vld [vmem:[#allocation10 + $0x44] sm:$0xf0] }
  0xdb   : > { %v1790_v32 = vld [vmem:[#allocation10 + $0x190] sm:$0xf]  ;;  %976 = vmatpush.bf16.msra.mxu2 %v1767_v22  ;;  %v1759_v34 = vor.u32 %v1972_v31, %v1758_v30  ;;  %v1980_v35 = vld [vmem:[#allocation10 + $0x194] sm:$0xf0]  ;;  %v1686_v38 = vld [vmem:[#allocation10 + $0xc0] sm:$0xf]  ;;  %v1623_v44 = vor.u32 %v1938_v37, %v1622_v36 }
  0xdc   : > { %v1954_v39 = vld [vmem:[#allocation10 + $0xc4] sm:$0xf0]  ;;  %v1750_v40 = vld [vmem:[#allocation10 + $0x140] sm:$0xf]  ;;  %v1791_v41 = vor.u32 %v1980_v35, %v1790_v32  ;;  %v1943_v46 = vld [vmem:[#allocation10 + $0x74] sm:$0xf] }
  0xdd   : > { %994 = vmatpush.bf16.msra.mxu3 %v1799_v25  ;;  %v1970_v42 = vld [vmem:[#allocation10 + $0x144] sm:$0xf0]  ;;  %v1782_v43 = vld [vmem:[#allocation10 + $0x180] sm:$0xf]  ;;  %949 = vmatpush.bf16.msra.mxu0 %v1631_v29  ;;  %v1648_v47 = vld [vmem:[#allocation10 + $0x78] sm:$0xf0]  ;;  %v1687_v48 = vor.u32 %v1954_v39, %v1686_v38 }
  0xde   : > { %v1978_v45 = vld [vmem:[#allocation10 + $0x184] sm:$0xf0]  ;;  %963 = vmatpush.bf16.msra.mxu1 %v1695_v33  ;;  %v1751_v49 = vor.u32 %v1970_v42, %v1750_v40  ;;  %v1614_v50 = vld [vmem:[#allocation10 + $0x30] sm:$0xf]  ;;  %v1936_v51 = vld [vmem:[#allocation10 + $0x34] sm:$0xf0]  ;;  %v1651_v57 = vor.u32 %v1943_v46, %v1648_v47 }
  0xdf   : > { %977 = vmatpush.bf16.msra.mxu2 %v1759_v34  ;;  %v1678_v52 = vld [vmem:[#allocation10 + $0xb0] sm:$0xf]  ;;  %v1952_v53 = vld [vmem:[#allocation10 + $0xb4] sm:$0xf0]  ;;  %v1783_v56 = vor.u32 %v1978_v45, %v1782_v43  ;;  %v1615_v58 = vor.u32 %v1936_v51, %v1614_v50  ;;  %v1941_v59 = vld [vmem:[#allocation10 + $0x64] sm:$0xf] }
  0xe0   : > { %v1742_v54 = vld [vmem:[#allocation10 + $0x130] sm:$0xf]  ;;  %v1968_v55 = vld [vmem:[#allocation10 + $0x134] sm:$0xf0]  ;;  %v1640_v60 = vld [vmem:[#allocation10 + $0x68] sm:$0xf0]  ;;  %v1679_v61 = vor.u32 %v1952_v53, %v1678_v52 }
  0xe1   : > { %995 = vmatpush.bf16.msra.mxu3 %v1791_v41  ;;  %950 = vmatpush.bf16.msra.mxu0 %v1623_v44  ;;  %v1743_v62 = vor.u32 %v1968_v55, %v1742_v54  ;;  %v1606_v63 = vld [vmem:[#allocation10 + $0x20] sm:$0xf]  ;;  %v1934_v0 = vld [vmem:[#allocation10 + $0x24] sm:$0xf0]  ;;  %v1939_v5 = vld [vmem:[#allocation10 + $0x54] sm:$0xf]  ;;  %v1643_v8 = vor.u32 %v1941_v59, %v1640_v60 }
  0xe2   : > { %964 = vmatpush.bf16.msra.mxu1 %v1687_v48  ;;  %v1670_v1 = vld [vmem:[#allocation10 + $0xa0] sm:$0xf]  ;;  %v1950_v2 = vld [vmem:[#allocation10 + $0xa4] sm:$0xf0]  ;;  %v1632_v6 = vld [vmem:[#allocation10 + $0x58] sm:$0xf0]  ;;  %v1607_v9 = vor.u32 %v1934_v0, %v1606_v63 }
  0xe3   : > { %978 = vmatpush.bf16.msra.mxu2 %v1751_v49  ;;  %v1734_v3 = vld [vmem:[#allocation10 + $0x120] sm:$0xf]  ;;  %v1966_v4 = vld [vmem:[#allocation10 + $0x124] sm:$0xf0]  ;;  %v1598_v7 = vld [vmem:[#allocation10 + $0x10] sm:$0xf]  ;;  %v1671_v13 = vor.u32 %v1950_v2, %v1670_v1  ;;  %v1635_v21 = vor.u32 %v1939_v5, %v1632_v6 }
  0xe4   : > { %v1932_v10 = vld [vmem:[#allocation10 + $0x14] sm:$0xf0]  ;;  %v1662_v11 = vld [vmem:[#allocation10 + $0x90] sm:$0xf]  ;;  %v1735_v14 = vor.u32 %v1966_v4, %v1734_v3  ;;  %v2832_v17 = vld [vmem:[#allocation10 + $0x44] sm:$0xf] }
  0xe5   : > { %996 = vmatpush.bf16.msra.mxu3 %v1783_v56  ;;  %951 = vmatpush.bf16.msra.mxu0 %v1615_v58  ;;  %v1948_v12 = vld [vmem:[#allocation10 + $0x94] sm:$0xf0]  ;;  %v1726_v15 = vld [vmem:[#allocation10 + $0x110] sm:$0xf]  ;;  %v2834_v18 = vld [vmem:[#allocation10 + $0x48] sm:$0xf0]  ;;  %v1599_v26 = vor.u32 %v1932_v10, %v1598_v7 }
  0xe6   : > { %965 = vmatpush.bf16.msra.mxu1 %v1679_v61  ;;  %v1964_v16 = vld [vmem:[#allocation10 + $0x114] sm:$0xf0]  ;;  %v2836_v19 = vld [vmem:[#allocation10] sm:$0xf]  ;;  %v2838_v20 = vld [vmem:[#allocation10 + $0x4] sm:$0xf0]  ;;  %v1663_v27 = vor.u32 %v1948_v12, %v1662_v11  ;;  %v1627_v40 = vor.u32 %v2832_v17, %v2834_v18 }
  0xe7   : > { %979 = vmatpush.bf16.msra.mxu2 %v1743_v62  ;;  %v2840_v22 = vld [vmem:[#allocation10 + $0x80] sm:$0xf]  ;;  %v2842_v23 = vld [vmem:[#allocation10 + $0x84] sm:$0xf0]  ;;  %v1727_v28 = vor.u32 %v1964_v16, %v1726_v15  ;;  %v2848_v29 = vld [vmem:[#allocation10 + $0xf4] sm:$0xf]  ;;  %v1591_v44 = vor.u32 %v2838_v20, %v2836_v19 }
  0xe8   : > { %v2844_v24 = vld [vmem:[#allocation10 + $0x100] sm:$0xf]  ;;  %v2846_v25 = vld [vmem:[#allocation10 + $0x104] sm:$0xf0]  ;;  %v571_v31 = vld [vmem:[%s2807_s13 + $0x8] sm:$0xff]  ;;  %v1655_v50 = vor.u32 %v2842_v23, %v2840_v22  ;;  %s2892_s26 = scalar_lea.vmem [#allocation14], %s2013_s16 }
  0xe9   : > { %1003 = vmatpush.bf16.msrb.mxu3 %v1651_v57  ;;  %952 = vmatpush.bf16.msra.mxu0 %v1607_v9  ;;  %v565_v30 = vld [vmem:[%s2799_s20 + $0x18] sm:$0xff]  ;;  %v1712_v33 = vld [vmem:[#allocation10 + $0xf8] sm:$0xf0]  ;;  %v1975_v34 = vld [vmem:[#allocation10 + $0x174] sm:$0xf]  ;;  %v577_v36 = vunpack.c.h.bf16 %v571_v31  ;;  %v576_v38 = vunpack.c.l.bf16 %v571_v31  ;;  %v1719_v51 = vor.u32 %v2846_v25, %v2844_v24  ;;  %s1349_s14 = scalar_lea.sflag [#allocation4], %s2795_s24 }
  0xea   : > { %v573_v32 = vld [vmem:[%s2807_s13 + $0x18] sm:$0xff]  ;;  %966 = vmatpush.bf16.msra.mxu1 %v1671_v13  ;;  %v1776_v35 = vld [vmem:[#allocation10 + $0x178] sm:$0xf0]  ;;  %v564_v42 = vld [vmem:[%s2799_s20 + $0x10] sm:$0xff]  ;;  %v1715_v52 = vor.u32 %v2848_v29, %v1712_v33  ;;  %p3005_p6 = scmp.ne.s32.totalorder %s2988_s17, 0 }
  0xeb   : > { %980 = vmatpush.bf16.msra.mxu2 %v1735_v14  ;;  %v581_v37 = vunpack.c.h.bf16 %v573_v32  ;;  %v580_v39 = vunpack.c.l.bf16 %v573_v32  ;;  %v569_v41 = vld [vmem:[%s2799_s20 + $0x38] sm:$0xff]  ;;  %v568_v43 = vld [vmem:[%s2799_s20 + $0x30] sm:$0xff]  ;;  %v585_v45 = vmul.f32 0.1, %v577_v36  ;;  %v584_v47 = vmul.f32 0.1, %v576_v38 }
  0xec   : > { %v1935_v48 = vld [vmem:[#allocation10 + $0x34] sm:$0xf]  ;;  %v1616_v49 = vld [vmem:[#allocation10 + $0x38] sm:$0xf0]  ;;  %v2865_v54 = vld [vmem:[#allocation10 + $0xe4] sm:$0xf]  ;;  %v1779_v63 = vor.u32 %v1975_v34, %v1776_v35 }
  0xed   : > { %1004 = vmatpush.bf16.msrb.mxu3 %v1643_v8  ;;  %v589_v46 = vmul.f32 0.1, %v581_v37  ;;  %953 = vmatpush.bf16.msra.mxu0 %v1599_v26  ;;  %v588_v53 = vmul.f32 0.1, %v580_v39  ;;  %v1704_v55 = vld [vmem:[#allocation10 + $0xe8] sm:$0xf0]  ;;  %v593_v56 = vadd.f32 %v585_v45, %v565_v30  ;;  %v592_v58 = vadd.f32 %v584_v47, %v564_v42 }
  0xee   : > { %967 = vmatpush.bf16.msra.mxu1 %v1663_v27  ;;  %v1973_v59 = vld [vmem:[#allocation10 + $0x164] sm:$0xf]  ;;  %v1768_v60 = vld [vmem:[#allocation10 + $0x168] sm:$0xf0]  ;;  %v562_v61 = vld [vmem:[%s2799_s20] sm:$0xff]  ;;  %v1619_v13 = vor.u32 %v1935_v48, %v1616_v49  ;;  %v1707_v17 = vor.u32 %v2865_v54, %v1704_v55  ;;  %s1910_s15 = sshll.u32 (%p3005_p6), %s2532_s9, 1 }
  0xef   : > { %981 = vmatpush.bf16.msra.mxu2 %v1727_v28  ;;  %v597_v57 = vadd.f32 %v589_v46, %v569_v41  ;;  %v570_v62 = vld [vmem:[%s2807_s13] sm:$0xff]  ;;  %v596_v0 = vadd.f32 %v588_v53, %v568_v43  ;;  %v572_v2 = vld [vmem:[%s2807_s13 + $0x10] sm:$0xff]  ;;  %v563_v4 = vld [vmem:[%s2799_s20 + $0x8] sm:$0xff]  ;;  %v1771_v22 = vor.u32 %v1973_v59, %v1768_v60  ;;  %s1357_s21 = ssub.s32 (%p3005_p6), 3, %s1910_s15 }
  0xf0   : > { %v566_v1 = vld [vmem:[%s2799_s20 + $0x20] sm:$0xff]  ;;  %v574_v3 = vunpack.c.l.bf16 %v570_v62  ;;  %v575_v5 = vunpack.c.h.bf16 %v570_v62  ;;  %v578_v7 = vunpack.c.l.bf16 %v572_v2  ;;  %v567_v8 = vld [vmem:[%s2799_s20 + $0x28] sm:$0xff]  ;;  %v579_v9 = vunpack.c.h.bf16 %v572_v2  ;;  %v1933_v10 = vld [vmem:[#allocation10 + $0x24] sm:$0xf]  ;;  %p1358_p9 = scmp.lt.s32.totalorder (%p3005_p6), %s1357_s21, 2 }
  0xf1   : > { %1005 = vmatpush.bf16.msrb.mxu3 %v1635_v21  ;;  %v2872_v6 = vpack.c.bf16 %v597_v57, %v593_v56  ;;  %v1983_v11 = vld [vmem:[#allocation10 + $0x1b4] sm:$0xf]  ;;  %954 = vmatpush.bf16.msra.mxu0 %v1591_v44  ;;  %v2875_v12 = vpack.c.bf16 %v596_v0, %v592_v58  ;;  %v1808_v16 = vld [vmem:[#allocation10 + $0x1b8] sm:$0x30]  ;;  %v1608_v20 = vld [vmem:[#allocation10 + $0x28] sm:$0xf0] }
  0xf2   : > { %v582_v14 = vmul.f32 0.1, %v574_v3  ;;  %v583_v15 = vmul.f32 0.1, %v575_v5  ;;  %968 = vmatpush.bf16.msra.mxu1 %v1655_v50  ;;  %v586_v18 = vmul.f32 0.1, %v578_v7  ;;  %v1811_v21 = vor.u32 %v1983_v11, %v1808_v16 }
  0xf3   : > { %982 = vmatpush.bf16.msra.mxu2 %v1719_v51  ;;  %v587_v19 = vmul.f32 0.1, %v579_v9  ;;  %v1955_v25 = vld [vmem:[#allocation10 + $0xd4] sm:$0xf]  ;;  %v1696_v26 = vld [vmem:[#allocation10 + $0xd8] sm:$0xf0]  ;;  %1812 = vmatmul.msk.bf16.vlgmr.msra.gmra.mxu3 %vm936_vm1, %v2872_v6  ;;  %v1611_v32 = vor.u32 %v1933_v10, %v1608_v20 }
  0xf4   : > { %v590_v23 = vadd.f32 %v582_v14, %v562_v61  ;;  %v591_v24 = vadd.f32 %v583_v15, %v563_v4  ;;  %v594_v27 = vadd.f32 %v586_v18, %v566_v1  ;;  %v945_v29 = vsel %vm940_vm0, %v1811_v21, 0  ;;  %v1971_v30 = vld [vmem:[#allocation10 + $0x154] sm:$0xf]  ;;  %v1760_v31 = vld [vmem:[#allocation10 + $0x158] sm:$0xf0]  ;;  %v1990_v20 = vld [vmem:[#allocation11 + $0x28] sm:$0xff] }
  0xf5   : > { %1006 = vmatpush.bf16.msrb.mxu3 %v1627_v40  ;;  %1017 = vmatpush.bf16.msrb.mxu0 %v1715_v52  ;;  %v595_v28 = vadd.f32 %v587_v19, %v567_v8  ;;  %v1981_v33 = vld [vmem:[#allocation10 + $0x1a4] sm:$0xf]  ;;  %v1800_v34 = vld [vmem:[#allocation10 + $0x1a8] sm:$0xf0]  ;;  %v1931_v37 = vld [vmem:[#allocation10 + $0x14] sm:$0xf]  ;;  %v1699_v40 = vor.u32 %v1955_v25, %v1696_v26  ;;  %v1763_v41 = vor.u32 %v1971_v30, %v1760_v31 }
  0xf6   : > { %1031 = vmatpush.bf16.msrb.mxu1 %v1779_v63  ;;  %983 = vmatmul.bf16.vlgmr.msra.gmra.mxu2 %v2875_v12  ;;  %v598_v35 = vpack.c.bf16 %v594_v27, %v590_v23  ;;  %v1600_v38 = vld [vmem:[#allocation10 + $0x18] sm:$0xf0]  ;;  %v1803_v39 = vor.u32 %v1981_v33, %v1800_v34  ;;  %v1953_v42 = vld [vmem:[#allocation10 + $0xc4] sm:$0xf]  ;;  %v1688_v43 = vld [vmem:[#allocation10 + $0xc8] sm:$0xf0] }
  0xf7   : > { %v2882_v36 = vpack.c.bf16 %v595_v28, %v591_v24  ;;  %1049 = vmatpush.bf16.msrb.mxu2 %v945_v29  ;;  %v1979_v44 = vld [vmem:[#allocation10 + $0x194] sm:$0xf]  ;;  %v1969_v45 = vld [vmem:[#allocation10 + $0x144] sm:$0xf]  ;;  %v1752_v46 = vld [vmem:[#allocation10 + $0x148] sm:$0xf0]  ;;  %v1603_v48 = vor.u32 %v1931_v37, %v1600_v38  ;;  %v1691_v52 = vor.u32 %v1953_v42, %v1688_v43 }
  0xf8   : > { %955 = vmatmul.bf16.vlgmr.msra.gmra.mxu0 %v598_v35  ;;  %v1792_v47 = vld [vmem:[#allocation10 + $0x198] sm:$0xf0]  ;;  %v1929_v49 = vld [vmem:[#allocation10 + $0x4] sm:$0xf]  ;;  %v1592_v50 = vld [vmem:[#allocation10 + $0x8] sm:$0xf0]  ;;  %v1755_v53 = vor.u32 %v1969_v45, %v1752_v46 }
  0xf9   : > { %1007 = vmatpush.bf16.msrb.mxu3 %v1619_v13  ;;  %1018 = vmatpush.bf16.msrb.mxu0 %v1707_v17  ;;  %v1795_v51 = vor.u32 %v1979_v44, %v1792_v47  ;;  %v1951_v54 = vld [vmem:[#allocation10 + $0xb4] sm:$0xf]  ;;  %v1977_v55 = vld [vmem:[#allocation10 + $0x184] sm:$0xf]  ;;  %v1784_v56 = vld [vmem:[#allocation10 + $0x188] sm:$0xf0]  ;;  %v1595_v60 = vor.u32 %v1929_v49, %v1592_v50 }
  0xfa   : > { %1032 = vmatpush.bf16.msrb.mxu1 %v1771_v22  ;;  %v1680_v57 = vld [vmem:[#allocation10 + $0xb8] sm:$0xf0]  ;;  %v1967_v58 = vld [vmem:[#allocation10 + $0x134] sm:$0xf]  ;;  %v1787_v61 = vor.u32 %v1977_v55, %v1784_v56  ;;  %v1949_v0 = vld [vmem:[#allocation10 + $0xa4] sm:$0xf] }
  0xfb   : > { %969 = vmatmul.bf16.vlgmr.msra.gmra.mxu1 %v2882_v36  ;;  %1050 = vmatpush.bf16.msrb.mxu2 %v1803_v39  ;;  %v1744_v59 = vld [vmem:[#allocation10 + $0x138] sm:$0xf0]  ;;  %v1683_v62 = vor.u32 %v1951_v54, %v1680_v57  ;;  %v1672_v2 = vld [vmem:[#allocation10 + $0xa8] sm:$0xf0]  ;;  %v1965_v3 = vld [vmem:[#allocation10 + $0x124] sm:$0xf] }
  0xfc   : > { %v1747_v63 = vor.u32 %v1967_v58, %v1744_v59  ;;  %v1992_v1 = vld [vmem:[#allocation11 + $0x38] sm:$0xff]  ;;  %v1736_v4 = vld [vmem:[#allocation10 + $0x128] sm:$0xf0]  ;;  %v1675_v5 = vor.u32 %v1949_v0, %v1672_v2  ;;  %v1947_v8 = vld [vmem:[#allocation10 + $0x94] sm:$0xf] }
  0xfd   : > { %1008 = vmatpush.bf16.msrb.mxu3 %v1611_v32  ;;  %1019 = vmatpush.bf16.msrb.mxu0 %v1699_v40  ;;  %v1739_v7 = vor.u32 %v1965_v3, %v1736_v4  ;;  %v1664_v9 = vld [vmem:[#allocation10 + $0x98] sm:$0xf0]  ;;  %v1963_v10 = vld [vmem:[#allocation10 + $0x114] sm:$0xf]  ;;  %v1945_v16 = vld [vmem:[#allocation10 + $0x84] sm:$0xf] }
  0xfe   : > { %1033 = vmatpush.bf16.msrb.mxu1 %v1763_v41  ;;  %v1728_v11 = vld [vmem:[#allocation10 + $0x118] sm:$0xf0]  ;;  %v1991_v13 = vld [vmem:[#allocation11 + $0x30] sm:$0xff]  ;;  %v1667_v14 = vor.u32 %v1947_v8, %v1664_v9  ;;  %v1656_v17 = vld [vmem:[#allocation10 + $0x88] sm:$0xf0] }
  0xff   : > { %1051 = vmatpush.bf16.msrb.mxu2 %v1795_v51  ;;  %v1731_v15 = vor.u32 %v1963_v10, %v1728_v11  ;;  %v1961_v18 = vld [vmem:[#allocation10 + $0x104] sm:$0xf]  ;;  %v1720_v19 = vld [vmem:[#allocation10 + $0x108] sm:$0xf0]  ;;  %v1659_v21 = vor.u32 %v1945_v16, %v1656_v17  ;;  %v1988_v23 = vld [vmem:[#allocation11 + $0x18] sm:$0xff] }
 0x100   : > { %v1723_v22 = vor.u32 %v1961_v18, %v1720_v19  ;;  %v1987_v24 = vld [vmem:[#allocation11 + $0x10] sm:$0xff]  ;;  %v1986_v25 = vld [vmem:[#allocation11 + $0x8] sm:$0xff]  ;;  %v2000_v26 = vld [vmem:[#allocation11 + $0x78] sm:$0xff] }
 0x101   : > { %1009 = vmatpush.bf16.msrb.mxu3 %v1603_v48  ;;  %1020 = vmatpush.bf16.msrb.mxu0 %v1691_v52  ;;  %v1985_v27 = vld [vmem:[#allocation11] sm:$0xff]  ;;  %v1999_v28 = vld [vmem:[#allocation11 + $0x70] sm:$0xff]  ;;  %v1998_v29 = vld [vmem:[#allocation11 + $0x68] sm:$0xff] }
 0x102   : > { %1034 = vmatpush.bf16.msrb.mxu1 %v1755_v53  ;;  %v1997_v30 = vld [vmem:[#allocation11 + $0x60] sm:$0xff]  ;;  %v1996_v32 = vld [vmem:[#allocation11 + $0x58] sm:$0xff]  ;;  %v1995_v37 = vld [vmem:[#allocation11 + $0x50] sm:$0xff] }
 0x103   : > { %1052 = vmatpush.bf16.msrb.mxu2 %v1787_v61  ;;  %v1075_v40 = vld [vmem:[%s2815_s5] sm:$0xff]  ;;  %v1076_v43 = vld [vmem:[%s2815_s5 + $0x8] sm:$0xff] }
 0x104   : > { %v1994_v44 = vld [vmem:[#allocation11 + $0x48] sm:$0xff]  ;;  %v1077_v47 = vunpack.c.l.bf16 %v1075_v40  ;;  %v1079_v49 = vunpack.c.l.bf16 %v1076_v43  ;;  %v1993_v51 = vld [vmem:[#allocation11 + $0x40] sm:$0xff]  ;;  %v1078_v10 = vunpack.c.h.bf16 %v1075_v40 }
 0x105   : > { %1010 = vmatpush.bf16.msrb.mxu3 %v1595_v60  ;;  %1021 = vmatpush.bf16.msrb.mxu0 %v1683_v62 }
 0x106   : > { %1035 = vmatpush.bf16.msrb.mxu1 %v1747_v63  ;;  %1813 = vmatmul.msk.bf16.vlgmr.msrb.gmra.mxu2 %vm936_vm1, %v2872_v6  ;;  %v1989_v6 = vld [vmem:[#allocation11 + $0x20] sm:$0xff]  ;;  %v1081_v54 = vmul.f32 0.05, %v1077_v47  ;;  %v1083_v55 = vmul.f32 0.05, %v1079_v49 }
 0x107   : > { %1219 = vmatpush.bf16.msra.mxu2 %v1992_v1  ;;  %v1082_v17 = vmul.f32 0.05, %v1078_v10 }
 0x108   : > { %1011 = vmatmul.bf16.vlgmr.msrb.gmra.mxu3 %v598_v35 }
 0x109   : > { %1022 = vmatpush.bf16.msrb.mxu0 %v1675_v5  ;;  %1233 = vmatpush.bf16.msra.mxu3 %v2000_v26  ;;  %v2005_v26 = vld [vmem:[#allocation13 + $0x20] sm:$0xff] }
 0x10a   : > { %1036 = vmatpush.bf16.msrb.mxu1 %v1739_v7 }
 0x10b   : > { %1220 = vmatpush.bf16.msra.mxu2 %v1991_v13  ;;  %v1080_v13 = vunpack.c.h.bf16 %v1076_v43 }
 0x10d   : > { %1023 = vmatpush.bf16.msrb.mxu0 %v1667_v14  ;;  %1234 = vmatpush.bf16.msra.mxu3 %v1999_v28  ;;  %v1084_v18 = vmul.f32 0.05, %v1080_v13  ;;  %v2003_v28 = vld [vmem:[#allocation13 + $0x10] sm:$0xff] }
 0x10e   : > { %1037 = vmatpush.bf16.msrb.mxu1 %v1731_v15 }
 0x10f   : > { %1221 = vmatpush.bf16.msra.mxu2 %v1990_v20 }
 0x111   : > { %1024 = vmatpush.bf16.msrb.mxu0 %v1659_v21  ;;  %1235 = vmatpush.bf16.msra.mxu3 %v1998_v29  ;;  %v2002_v29 = vld [vmem:[#allocation13 + $0x8] sm:$0xff] }
 0x112   : > { %1038 = vmatpush.bf16.msrb.mxu1 %v1723_v22 }
 0x113   : > { %1222 = vmatpush.bf16.msra.mxu2 %v1989_v6 }
 0x114   : > { %1025 = vmatmul.bf16.vlgmr.msrb.gmra.mxu0 %v2882_v36 }
 0x115   : > { %1039 = vmatmul.bf16.vlgmr.msrb.gmra.mxu1 %v2875_v12  ;;  %1236 = vmatpush.bf16.msra.mxu3 %v1997_v30  ;;  %v2001_v30 = vld [vmem:[#allocation13] sm:$0xff] }
 0x117   : > { %1223 = vmatpush.bf16.msra.mxu2 %v1988_v23  ;;  %v2008_v23 = vld [vmem:[#allocation13 + $0x38] sm:$0xff] }
 0x118   : > { %1330 = vmatpush.bf16.msra.mxu0 %v2008_v23 }
 0x119   : > { %1237 = vmatpush.bf16.msra.mxu3 %v1996_v32 }
 0x11b   : > { %1224 = vmatpush.bf16.msra.mxu2 %v1987_v24  ;;  %v2007_v24 = vld [vmem:[#allocation13 + $0x30] sm:$0xff] }
 0x11c   : > { %1331 = vmatpush.bf16.msra.mxu0 %v2007_v24 }
 0x11d   : > { %1238 = vmatpush.bf16.msra.mxu3 %v1995_v37 }
 0x11f   : > { %1225 = vmatpush.bf16.msra.mxu2 %v1986_v25  ;;  %v2006_v25 = vld [vmem:[#allocation13 + $0x28] sm:$0xff] }
 0x120   : > { %1332 = vmatpush.bf16.msra.mxu0 %v2006_v25 }
 0x121   : > { %1239 = vmatpush.bf16.msra.mxu3 %v1994_v44 }
 0x123   : > { %1226 = vmatpush.bf16.msra.mxu2 %v1985_v27  ;;  %v2004_v27 = vld [vmem:[#allocation13 + $0x18] sm:$0xff] }
 0x124   : > { %1333 = vmatpush.bf16.msra.mxu0 %v2005_v26 }
 0x125   : > { %1240 = vmatpush.bf16.msra.mxu3 %v1993_v51 }
 0x128   : > { %1334 = vmatpush.bf16.msra.mxu0 %v2004_v27 }
 0x12c   : > { %1335 = vmatpush.bf16.msra.mxu0 %v2003_v28 }
 0x130   : > { %1336 = vmatpush.bf16.msra.mxu0 %v2002_v29 }
 0x134   : > { %1337 = vmatpush.bf16.msra.mxu0 %v2001_v30 }
 0x175   : > { %v956_v12 = vpop.f32.mrf.mxu0 }
 0x176   : > { %v998_v34 = vpop.f32.mrf.mxu3 }
 0x178   : > { %v970_v31 = vpop.f32.mrf.mxu1 }
 0x179   : > { %v971_v33 = vadd.f32 %v970_v31, %v956_v12  ;;  %v984_v35 = vpop.f32.mrf.mxu2 }
 0x17b   : > { %v985_v36 = vadd.f32 %v984_v35, %v971_v33  ;;  %v2010_v33 = vld [vmem:[%s2817_s27] sm:$0xff]  }
 0x17c   : > { %v2012_v35 = vunpack.c.h.bf16 %v2010_v33 }
 0x17d   : > { %v999_v38 = vadd.f32 %v998_v34, %v985_v36  ;;  %v958_v41 = vpop.f32.mrf.mxu0  ;;  %v2011_v34 = vunpack.c.l.bf16 %v2010_v33 }
 0x17e   : > { %v1000_v52 = vpop.f32.mrf.mxu3 }
 0x17f   : > { %vm1059_vm2 = vcmp.ge.f32.partialorder %v999_v38, 0.0  ;;  %v1063_v39 = vmul.f32 0.1, %v999_v38  ;;  %v1257_v40 = vmul.f32 0.02, %v2011_v34 }
 0x180   : > { %v972_v42 = vpop.f32.mrf.mxu1 }
 0x181   : > { %v973_v45 = vadd.f32 %v972_v42, %v958_v41  ;;  %v1067_v46 = vsel %vm1059_vm2, %v999_v38, %v1063_v39  ;;  %v986_v48 = vpop.f32.mrf.mxu2  ;;  %v1258_v41 = vmul.f32 0.02, %v2012_v35 }
 0x182   : > { %1071 = vst [vmem:[%s2892_s26] sm:$0xff] %v1067_v46  ;;  %v1085_v58 = vadd.f32 %v1081_v54, %v1067_v46 }
 0x183   : > { %v987_v50 = vadd.f32 %v986_v48, %v973_v45  ;;  %v2102_v48 = vld [vmem:[%s2971_s7] ss:$0 sm:$0xff] }
 0x185   : > { %v1001_v53 = vadd.f32 %v1000_v52, %v987_v50 }
 0x187   : > { %vm1061_vm3 = vcmp.ge.f32.partialorder %v1001_v53, 0.0  ;;  %v1065_v56 = vmul.f32 0.1, %v1001_v53 }
 0x189   : > { %v1069_v57 = vsel %vm1061_vm3, %v1001_v53, %v1065_v56  ;;  %v1054_v1 = vpop.f32.mrf.mxu2 }
 0x18a   : > { %1073 = vst [vmem:[%s2892_s26 + $0x18] sm:$0xff] %v1069_v57  ;;  %v1087_v59 = vadd.f32 %v1083_v55, %v1069_v57 }
 0x18b   : > { %v1012_v61 = vpop.f32.mrf.mxu3 }
 0x18c   : > { %v1089_v60 = vpack.c.bf16 %v1087_v59, %v1085_v58 }
 0x18e   : > { %1227 = vmatmul.bf16.vlgmr.msra.gmra.mxu2 %v1089_v60 }
 0x191   : > { %v1026_v62 = vpop.f32.mrf.mxu0  ;;  %v1056_v15 = vpop.f32.mrf.mxu2 }
 0x192   : > { %v1027_v63 = vadd.f32 %v1026_v62, %v1012_v61  ;;  %v1040_v0 = vpop.f32.mrf.mxu1 }
 0x193   : > { %v1014_v5 = vpop.f32.mrf.mxu3 }
 0x194   : > { %v1041_v2 = vadd.f32 %v1040_v0, %v1027_v63 }
 0x196   : > { %v1055_v3 = vadd.f32 %v1054_v1, %v1041_v2 }
 0x198   : > { %vm1060_vm4 = vcmp.ge.f32.partialorder %v1055_v3, 0.0  ;;  %v1064_v4 = vmul.f32 0.1, %v1055_v3 }
 0x199   : > { %v1028_v7 = vpop.f32.mrf.mxu0 }
 0x19a   : > { %v1068_v8 = vsel %vm1060_vm4, %v1055_v3, %v1064_v4  ;;  %v1029_v9 = vadd.f32 %v1028_v7, %v1014_v5  ;;  %v1042_v11 = vpop.f32.mrf.mxu1 }
 0x19b   : > { %1072 = vst [vmem:[%s2892_s26 + $0x8] sm:$0xff] %v1068_v8  ;;  %v1086_v21 = vadd.f32 %v1082_v17, %v1068_v8 }
 0x19c   : > { %v1043_v14 = vadd.f32 %v1042_v11, %v1029_v9 }
 0x19e   : > { %v1057_v16 = vadd.f32 %v1056_v15, %v1043_v14 }
 0x1a0   : > { %vm1062_vm5 = vcmp.ge.f32.partialorder %v1057_v16, 0.0  ;;  %v1066_v19 = vmul.f32 0.1, %v1057_v16 }
 0x1a2   : > { %v1070_v20 = vsel %vm1062_vm5, %v1057_v16, %v1066_v19 }
 0x1a3   : > { %1074 = vst [vmem:[%s2892_s26 + $0x20] sm:$0xff] %v1070_v20  ;;  %v1088_v22 = vadd.f32 %v1084_v18, %v1070_v20 }
 0x1a5   : > { %v1090_v6 = vpack.c.bf16 %v1088_v22, %v1086_v21 }
 0x1a7   : > { %1241 = vmatmul.bf16.vlgmr.msra.gmra.mxu3 %v1090_v6 }
 0x211   : > { %v1228_v12 = vpop.f32.mrf.mxu2 }
 0x219   : > { %v1230_v37 = vpop.f32.mrf.mxu2 }
 0x22a   : > { %v1242_v31 = vpop.f32.mrf.mxu3 }
 0x22b   : > { %v1243_v32 = vadd.f32 %v1242_v31, %v1228_v12 }
 0x22d   : > { %v1249_v36 = vmul.f32 0.1, %v1243_v32  ;;  %vm1247_vm6 = vcmp.ge.f32.partialorder %v1243_v32, 0.0 }
 0x22f   : > { %v1251_v42 = vsel %vm1247_vm6, %v1243_v32, %v1249_v36 }
 0x230   : > { %v1259_v45 = vadd.f32 %v1257_v40, %v1251_v42 }
 0x232   : > { %v1244_v38 = vpop.f32.mrf.mxu3 }
 0x233   : > { %v1245_v39 = vadd.f32 %v1244_v38, %v1230_v37 }
 0x235   : > { %vm1248_vm7 = vcmp.ge.f32.partialorder %v1245_v39, 0.0  ;;  %v1250_v43 = vmul.f32 0.1, %v1245_v39 }
 0x237   : > { %v1252_v44 = vsel %vm1248_vm7, %v1245_v39, %v1250_v43 }
 0x238   : > { %v1260_v46 = vadd.f32 %v1258_v41, %v1252_v44 }
 0x23a   : > { %v1261_v47 = vpack.c.bf16 %v1260_v46, %v1259_v45 }
 0x23c   : > { %1338 = vmatmul.bf16.vlgmr.msra.gmra.mxu0 %v1261_v47 }
 0x2b9   : > { %v1339_v49 = vpop.f32.mrf.mxu0 }
 0x2ba   : > { %v1340_v50 = vadd.f32 %v2102_v48, %v1339_v49 }
 0x2bc   : > { %v1344_v51 = vadd.f32 %v1340_v50, %v1251_v42 }
 0x2be   : > { %1346 = vst [vmem:[%s2892_s26 + $0x10] sm:$0xff] %v1344_v51 }
 0x2c1   : > { %v1341_v52 = vpop.f32.mrf.mxu0 }
 0x2c2   : > { %v1342_v53 = vadd.f32 %v2102_v48, %v1341_v52  ;;  %1355 = sbr.rel (!%p3005_p6) target bundleno = 747 (0x2eb), region = 84 }
 0x2c4   : > { %v1345_v54 = vadd.f32 %v1342_v53, %v1252_v44 }
 0x2c6   : > { %1347 = vst [vmem:[%s2892_s26 + $0x28] sm:$0xff] %v1345_v54 }
 0x2c7   : > { %s3025_s21 = smov (!%p1358_p9, %s1357_s21), 2 }
 0x2c8   : > { %s1912_s20 = smul.u32 24, %s3025_s21 }
 0x2ca   : > { %s1362_s19 = ssub.s32 48, %s1912_s20 }
 0x2cb   : > { %s1363_s10 = sshll.u32 %s1362_s19, 4 }
 0x2cc   : > { %1364 = vsyncadd %s1349_s14, %s1363_s10  ;;  %p2910_p4 = scmp.ne.s32.totalorder %s1912_s20, 0  ;;  %s2014_s13 = smul.u32 48, %s2532_s9 }
 0x2cd   : > { %s1370_s17 = sshll.u32 %s2892_s26, 4  ;;  %s2916_s18 = smul.u32 384, %s3025_s21  ;;  %s2921_s17 = int_to_ptr.vmem [resolvable:$true] %s1370_s17 }
 0x2ce   : > { %s1368_s11 = scalar_lea.hbm %s2972_s8, %s2014_s13  ;;  %s2349_s16 = sshra.s32 %s2921_s17, 4  ;;  %s2350_s16 = int_to_ptr.vmem [resolvable:$true] %s2349_s16 }
 0x2cf   : > { %s1372_s27 = sshll.u32 %s1368_s11, 4  ;;  %s2351_s12 = sshrl.u32 %s2916_s18, 4  ;;  %s2923_s27 = int_to_ptr.hbm [resolvable:$true] %s1372_s27 }
 0x2d0   : > { %s2387_s9 = sshll.u32 %s2351_s12, 4  ;;  %s2354_s26 = sadd.s32 1, %s2351_s12 }
 0x2d1   : > { %p2353_p12 = scmp.ne.s32.totalorder %s2387_s9, %s2916_s18  ;;  %s2463_s15 = smov [#allocation14]  }
 0x2d2   : > { %s2360_s21 = scalar_lea.vmem %s2463_s15, 96 }
 0x2d3   : > { %s3027_s26 = smov (!%p2353_p12, %s2354_s26), %s2351_s12 }
 0x2d4   : > { %s2356_s23 = scalar_lea.vmem %s2350_s16, %s3027_s26 }
 0x2d5   : > { %p2357_p2 = scmp.ne.s32.totalorder %s2350_s16, %s2356_s23  ;;  %p2362_p1 = scmp.lt.s32.totalorder %s2360_s21, %s2356_s23 }
 0x2d7   : > { %p2358_p7 = pnand %p2357_p2, %p2910_p4 }
 0x2d9   : > { %p2359_p10 = pneg %p2358_p7 }
 0x2db   : > { %p2364_p0 = pnand %p2362_p1, %p2359_p10 }
 0x2dd   : > { %2367 = shalt.err (!%p2364_p0)
}
 0x2de   : > { %s2368_s20 = sshra.s32 %s2923_s27, 4  ;;  %s2379_s22 = scalar_lea.hbm %s2972_s8, 72  ;;  %s2369_s20 = int_to_ptr.hbm [resolvable:$true] %s2368_s20 }
 0x2df   : > { %s2375_s19 = scalar_lea.hbm %s2369_s20, %s3027_s26  ;;  %p2380_p3 = scmp.lt.s32.totalorder %s2369_s20, %s2972_s8 }
 0x2e0   : > { %p2376_p11 = scmp.ne.s32.totalorder %s2369_s20, %s2375_s19  ;;  %p2381_p8 = scmp.lt.s32.totalorder %s2379_s22, %s2375_s19 }
 0x2e2   : > { %p2377_p13 = pnand %p2376_p11, %p2910_p4  ;;  %p2382_p6 = por %p2381_p8, %p2380_p3 }
 0x2e4   : > { %p2378_p5 = pneg %p2377_p13 }
 0x2e6   : > { %p2383_p9 = pnand %p2382_p6, %p2378_p5 }
 0x2e8   : > { %2386 = shalt.err (!%p2383_p9)
}
 0x2e9   : > { %s2464_s16 = smov 384   ;;  %s2465_s12 = smov 24  }
 0x2ea   : > { %1378 = dma.vmem_to_hbm [thread:$0]  (%p2910_p4), %s2921_s17, %s2916_s18, %s2923_s27, %s1349_s14, %s2464_s16, %s2464_s16, %s2465_s12  }
 0x2eb PF: > { %s3007_s9 = sld [smem:[#allocation21_spill]]  ;;  %p3010_p2 = scmp.ge.s32.totalorder %s2442_s30, 2 }
 0x2ec   : > { %s3008_s26 = sld [smem:[#allocation24_spill]] }
 0x2f1   : > { %s1387_s23 = sand.u32 1, %s3007_s9  }
 0x2f2   : > { %p3009_p12 = scmp.ne.s32.totalorder %s3008_s26, 0  ;;  %s1388_s15 = scalar_lea.sflag [#allocation4], %s1387_s23 }
 0x2f4   : > { %p2043_p7 = pnand %p3010_p2, %p3009_p12 }
 0x2f6   : > { %p2044_p10 = pneg %p2043_p7 }
 0x2f8   : > { %2425 = dma.done.wait (%p2044_p10), %s1388_s15, 768  }
 0x2f9   : > { %2427 = vsyncadd (%p2044_p10), %s1388_s15, 4294966528  ;;  %s3011_s30 = sld [smem:[#allocation22_spill]]  ;;  %s3013_s27 = smov %s2434_s28 }
 0x2fa   : > { %s3012_s21 = sld [smem:[#allocation23_spill]]  ;;  %s3014_s28 = smov %s2438_s29 }
 0x2ff   : > { %p28_p1 = scmp.ge.s32.totalorder %s3011_s30, 4  }
 0x300   : > { %s3015_s29 = smov %s3012_s21 }
 0x301   :  { %30 = sbr.rel (!%p28_p1) target bundleno = 12 (0xc), region = 146 }
 0x306   :  { %1394 = vsyncpa [#allocation3], 1 }
 0x307   :  { %1396 = vsyncpa [#allocation3 + $0x1], 1 }
 0x308   :  { %1397 = vsyncpa [#allocation6], 1 }
 0x309   :  { %1399 = vsyncpa [#allocation6 + $0x1], 1 }
 0x30a   :  { %1400 = vsyncpa [#allocation9], 1 }
 0x30b   :  { %1402 = vsyncpa [#allocation9 + $0x1], 1 }
 0x30c   :  { %1403 = vsyncpa [#allocation12], 1 }
 0x30d   :  { %1404 = vsyncpa [#allocation4], 1 }
 0x30e   :  { %1406 = vsyncpa [#allocation4 + $0x1], 1 }

</bundles_post_ra>
